<compile_context>
chip_gen: v7x
topology: tpu7x:2x2x1
jax: 0.10.0
libtpu: 0.0.40
codegen_flags: <defaults>
</compile_context>

<pallas_src>
import functools

import jax
import jax.numpy as jnp
from jax.experimental import pallas as pl
from jax.experimental.pallas import tpu as pltpu

_SMOOTH = 1e-06


def _bce_sum_kernel(p_ref, t_ref, o_ref, acc_ref, *, lane, block_rows,
                    n_data_blocks, rows_in_last, need_mask):
    c = pl.program_id(0)           # core / outer "parallel" axis
    s = pl.program_id(1)           # sequential block axis within a core
    steps = pl.num_programs(1)
    g = c * steps + s              # global data-block index
    last = n_data_blocks - 1       # static python int

    @pl.when(s == 0)
    def _():
        acc_ref[...] = jnp.zeros_like(acc_ref)

    p = p_ref[...].astype(jnp.float32)
    t = t_ref[...].astype(jnp.float32)
    smooth = jnp.float32(_SMOOTH)
    one_plus = jnp.float32(1.0 + _SMOOTH)
    # Negation hoisted to the wrapper; smoothing folded into a single subtract.
    inner = t * jnp.log(p + smooth) + (1.0 - t) * jnp.log(one_plus - p)

    def add_to_acc(x):
        # Pure vreg-wise VALU adds: (block_rows,128) -> (8,128) accumulator.
        acc_ref[...] += jnp.sum(x.reshape(block_rows // 8, 8, lane), axis=0)

    if need_mask:
        # Steady-state blocks: plain element-wise accumulate (no mask work).
        @pl.when(g < last)
        def _():
            add_to_acc(inner)

        # Only the last data block can contain OOB (garbage) rows. Keep the
        # jnp.where (select) so NaNs from the garbage region never propagate.
        @pl.when(g == last)
        def _():
            rows_i = jax.lax.broadcasted_iota(jnp.int32, (block_rows, lane), 0)
            add_to_acc(jnp.where(rows_i < rows_in_last, inner, 0.0))
    else:
        # No row padding anywhere: accumulate every real data block unmasked.
        @pl.when(g <= last)
        def _():
            add_to_acc(inner)

    # Per-core finalize: one single-vreg sublane reduce, written lane-dense.
    @pl.when(s == steps - 1)
    def _():
        o_ref[0, 0] = jnp.sum(acc_ref[...], axis=0)


def _default_num_cores():
    """2 for chips with 2 TensorCores behind one JAX device, else 1."""
    try:
        kind = jax.devices()[0].device_kind.lower()
    except Exception:
        return 1
    if "lite" in kind or "v5e" in kind or "v6e" in kind or "v6 lite" in kind:
        return 1
    if "v4" in kind or "v5p" in kind or "v7" in kind:
        return 2
    return 1


def bce_loss(pred, target, *, block_rows=8192, lane=128, num_cores=None):
    """Mean BCE loss matching the PyTorch reference (any input shape)."""
    assert pred.shape == target.shape
    total = int(pred.size)

    pred_flat = pred.reshape(-1)
    target_flat = target.reshape(-1)

    rows = total // lane
    bulk = rows * lane

    # Ragged tail (< 128 elems): tiny jnp reduction instead of a full-array pad.
    tail_sum = jnp.float32(0.0)
    if bulk != total:
        pt = pred_flat[bulk:].astype(jnp.float32)
        tt = target_flat[bulk:].astype(jnp.float32)
        tail_sum = jnp.sum(tt * jnp.log(pt + jnp.float32(_SMOOTH))
                           + (1.0 - tt) * jnp.log(jnp.float32(1.0 + _SMOOTH) - pt))

    if rows == 0:
        return -tail_sum / jnp.float32(total)

    pred2 = pred_flat[:bulk].reshape(rows, lane)
    target2 = target_flat[:bulk].reshape(rows, lane)

    # Tile sizing: large blocks amortize per-grid-step overhead; clamp to the
    # array size for small inputs; keep a multiple of 8 (sublane).
    rows8 = ((rows + 7) // 8) * 8
    block_rows = max(8, min((block_rows // 8) * 8, rows8))

    n_blocks = pl.cdiv(rows, block_rows)              # data blocks
    if num_cores is None:
        num_cores = _default_num_cores()
    num_cores = max(1, min(num_cores, n_blocks))
    steps = pl.cdiv(n_blocks, num_cores)
    last_block = n_blocks - 1
    rows_in_last = rows - last_block * block_rows     # static python int
    need_mask = (rows % block_rows != 0)

    def in_map(c, s):
        # Clamp so over-split cores re-read the last block (result discarded
        # by the g<=last guards in the kernel).
        return (jnp.minimum(c * steps + s, last_block), 0)

    kernel = functools.partial(
        _bce_sum_kernel, lane=lane, block_rows=block_rows,
        n_data_blocks=n_blocks, rows_in_last=rows_in_last, need_mask=need_mask)

    partials = pl.pallas_call(
        kernel,
        out_shape=jax.ShapeDtypeStruct((num_cores, 1, lane), jnp.float32),
        grid_spec=pltpu.PrefetchScalarGridSpec(
            num_scalar_prefetch=0,
            grid=(num_cores, steps),
            in_specs=[
                pl.BlockSpec((block_rows, lane), in_map),
                pl.BlockSpec((block_rows, lane), in_map),
            ],
            out_specs=pl.BlockSpec((1, 1, lane), lambda c, s: (c, 0, 0)),
            scratch_shapes=[pltpu.VMEM((8, lane), jnp.float32)],
        ),
        compiler_params=pltpu.CompilerParams(
            dimension_semantics=("parallel", "arbitrary"),
            vmem_limit_bytes=32 * 1024 * 1024,
        ),
    )(pred2, target2)

    # Tiny final cross-lane / cross-core reduction + hoisted negation + mean.
    return -(jnp.sum(partials) + tail_sum) / jnp.float32(total)


def _bce_ref(pred, target):
    # Matches the PyTorch module (which also uses the 1e-6 smoothing inside log).
    smooth = 1e-06
    size = pred.shape[0]
    p = pred.reshape(size, -1).astype(jnp.float32)
    t = target.reshape(size, -1).astype(jnp.float32)
    loss = -(t * jnp.log(p + smooth) + (1 - t) * jnp.log(1 - p + smooth))
    return jnp.mean(loss)


if __name__ == "__main__":
    key = jax.random.PRNGKey(0)

    # Test 1: NCHW inputs as the PyTorch module would receive (no padding path).
    kp, kt = jax.random.split(key)
    shape = (2, 4, 16, 16)
    pred = jax.nn.sigmoid(jax.random.normal(kp, shape, dtype=jnp.float32))
    target = (jax.random.uniform(kt, shape) > 0.5).astype(jnp.float32)

    out = jax.block_until_ready(bce_loss(pred, target))
    ref = jax.block_until_ready(_bce_ref(pred, target))
    assert jnp.allclose(out, ref, rtol=1e-5, atol=1e-6), (out, ref)

    # Test 2: ragged size -> exercises the jnp tail path, last-block row masking,
    # and the two-core "parallel" split (small block_rows to force many blocks).
    kp2, kt2 = jax.random.split(jax.random.PRNGKey(1))
    shape2 = (3, 5, 17, 19)
    pred2 = jax.nn.sigmoid(jax.random.normal(kp2, shape2, dtype=jnp.float32))
    target2 = (jax.random.uniform(kt2, shape2) > 0.5).astype(jnp.float32)

    out2 = jax.block_until_ready(bce_loss(pred2, target2, block_rows=8, num_cores=2))
    ref2 = jax.block_until_ready(_bce_ref(pred2, target2))
    assert jnp.allclose(out2, ref2, rtol=1e-5, atol=1e-6), (out2, ref2)

    # Test 3: odd shape with all defaults (auto num_cores, big-tile clamp,
    # masked last block + tail handled automatically).
    kp3, kt3 = jax.random.split(jax.random.PRNGKey(2))
    shape3 = (2, 3, 25, 25)
    pred3 = jax.nn.sigmoid(jax.random.normal(kp3, shape3, dtype=jnp.float32))
    target3 = (jax.random.uniform(kt3, shape3) > 0.5).astype(jnp.float32)

    out3 = jax.block_until_ready(bce_loss(pred3, target3))
    ref3 = jax.block_until_ready(_bce_ref(pred3, target3))
    assert jnp.allclose(out3, ref3, rtol=1e-5, atol=1e-6), (out3, ref3)

    print("KERNEL_OK")
</pallas_src>

<mosaic_0001>
module attributes {stable_mosaic.version = 11 : i64} {
  func.func @_bce_sum_kernel(%arg0: i32, %arg1: i32, %arg2: memref<16x128xf32, #tpu.memory_space<vmem>>, %arg3: memref<16x128xf32, #tpu.memory_space<vmem>>, %arg4: memref<1x1x128xf32, #tpu.memory_space<vmem>>, %arg5: memref<8x128xf32, #tpu.memory_space<vmem>>) attributes {dimension_semantics = [#tpu.dimension_semantics<parallel>, #tpu.dimension_semantics<arbitrary>], iteration_bounds = array<i64: 1, 1>, scalar_prefetch = 0 : i64, scratch_operands = 1 : i64, tpu.core_type = #tpu.core_type<tc>, window_params = [{transform_indices = @transform_0, window_bounds = array<i64: 16, 128>}, {transform_indices = @transform_1, window_bounds = array<i64: 16, 128>}, {transform_indices = @transform_2, window_bounds = array<i64: 1, 1, 128>}]} {
    %c1_i32 = arith.constant 1 : i32
    %0 = arith.muli %arg0, %c1_i32 : i32
    %1 = arith.addi %0, %arg1 : i32
    %c0_i32 = arith.constant 0 : i32
    %2 = arith.cmpi eq, %arg1, %c0_i32 : i32
    %3 = arith.extui %2 : i1 to i32
    %c0_i32_0 = arith.constant 0 : i32
    %4 = arith.cmpi ne, %3, %c0_i32_0 : i32
    scf.if %4 {
      %cst_10 = arith.constant 0.000000e+00 : f32
      %24 = vector.broadcast %cst_10 : f32 to vector<8x128xf32>
      %c0_11 = arith.constant 0 : index
      %c0_12 = arith.constant 0 : index
      %25 = vector.load %arg5[%c0_11, %c0_12] : memref<8x128xf32, #tpu.memory_space<vmem>>, vector<8x128xf32>
      tpu.vector_store %arg5[%c0_11, %c0_12], %24 {strides = array<i32>} : memref<8x128xf32, #tpu.memory_space<vmem>>, vector<8x128xf32>,
    } else {
    }
    %c0 = arith.constant 0 : index
    %c0_1 = arith.constant 0 : index
    %5 = vector.load %arg2[%c0, %c0_1] : memref<16x128xf32, #tpu.memory_space<vmem>>, vector<16x128xf32>
    %c0_2 = arith.constant 0 : index
    %c0_3 = arith.constant 0 : index
    %6 = vector.load %arg3[%c0_2, %c0_3] : memref<16x128xf32, #tpu.memory_space<vmem>>, vector<16x128xf32>
    %cst = arith.constant 9.99999997E-7 : f32
    %7 = vector.broadcast %cst : f32 to vector<16x128xf32>
    %8 = arith.addf %5, %7 : vector<16x128xf32>
    %9 = math.log %8 : vector<16x128xf32>
    %10 = arith.mulf %6, %9 : vector<16x128xf32>
    %cst_4 = arith.constant 1.000000e+00 : f32
    %11 = vector.broadcast %cst_4 : f32 to vector<16x128xf32>
    %12 = arith.subf %11, %6 : vector<16x128xf32>
    %cst_5 = arith.constant 1.00000095 : f32
    %13 = vector.broadcast %cst_5 : f32 to vector<16x128xf32>
    %14 = arith.subf %13, %5 : vector<16x128xf32>
    %15 = math.log %14 : vector<16x128xf32>
    %16 = arith.mulf %12, %15 : vector<16x128xf32>
    %17 = arith.addf %10, %16 : vector<16x128xf32>
    %c0_i32_6 = arith.constant 0 : i32
    %18 = arith.cmpi sle, %1, %c0_i32_6 : i32
    %19 = arith.extui %18 : i1 to i32
    %c0_i32_7 = arith.constant 0 : i32
    %20 = arith.cmpi ne, %19, %c0_i32_7 : i32
    scf.if %20 {
      %c0_10 = arith.constant 0 : index
      %c0_11 = arith.constant 0 : index
      %24 = vector.load %arg5[%c0_10, %c0_11] : memref<8x128xf32, #tpu.memory_space<vmem>>, vector<8x128xf32>
      %25 = vector.shape_cast %17 : vector<16x128xf32> to vector<2x8x128xf32>
      %cst_12 = arith.constant dense<0.000000e+00> : vector<8x128xf32>
      %26 = vector.multi_reduction <add>, %25, %cst_12 [0] : vector<2x8x128xf32> to vector<8x128xf32>
      %27 = arith.addf %24, %26 : vector<8x128xf32>
      %c0_13 = arith.constant 0 : index
      %c0_14 = arith.constant 0 : index
      %28 = vector.load %arg5[%c0_13, %c0_14] : memref<8x128xf32, #tpu.memory_space<vmem>>, vector<8x128xf32>
      tpu.vector_store %arg5[%c0_13, %c0_14], %27 {strides = array<i32>} : memref<8x128xf32, #tpu.memory_space<vmem>>, vector<8x128xf32>,
    } else {
    }
    %c0_i32_8 = arith.constant 0 : i32
    %21 = arith.cmpi eq, %arg1, %c0_i32_8 : i32
    %22 = arith.extui %21 : i1 to i32
    %c0_i32_9 = arith.constant 0 : i32
    %23 = arith.cmpi ne, %22, %c0_i32_9 : i32
    scf.if %23 {
      %c0_10 = arith.constant 0 : index
      %c0_11 = arith.constant 0 : index
      %24 = vector.load %arg5[%c0_10, %c0_11] : memref<8x128xf32, #tpu.memory_space<vmem>>, vector<8x128xf32>
      %cst_12 = arith.constant dense<0.000000e+00> : vector<128xf32>
      %25 = vector.multi_reduction <add>, %24, %cst_12 [0] : vector<8x128xf32> to vector<128xf32>
      %c0_13 = arith.constant 0 : index
      %c0_14 = arith.constant 0 : index
      %c0_15 = arith.constant 0 : index
      %26 = vector.load %arg4[%c0_13, %c0_14, %c0_15] : memref<1x1x128xf32, #tpu.memory_space<vmem>>, vector<1x1x128xf32>
      %27 = vector.shape_cast %26 : vector<1x1x128xf32> to vector<128xf32>
      %28 = vector.shape_cast %25 : vector<128xf32> to vector<1x1x128xf32>
      tpu.vector_store %arg4[%c0_13, %c0_14, %c0_15], %28 {strides = array<i32>} : memref<1x1x128xf32, #tpu.memory_space<vmem>>, vector<1x1x128xf32>,
    } else {
    }
    return
  }
  func.func @transform_0(%arg0: i32, %arg1: i32) -> (i32, i32) {
    %c1_i32 = arith.constant 1 : i32
    %0 = arith.muli %arg0, %c1_i32 : i32
    %1 = arith.addi %0, %arg1 : i32
    %c0_i32 = arith.constant 0 : i32
    %2 = arith.minsi %1, %c0_i32 : i32
    %c0_i32_0 = arith.constant 0 : i32
    %c0_i32_1 = arith.constant 0 : i32
    return %2, %c0_i32_0 : i32, i32
  }
  func.func @transform_1(%arg0: i32, %arg1: i32) -> (i32, i32) {
    %c1_i32 = arith.constant 1 : i32
    %0 = arith.muli %arg0, %c1_i32 : i32
    %1 = arith.addi %0, %arg1 : i32
    %c0_i32 = arith.constant 0 : i32
    %2 = arith.minsi %1, %c0_i32 : i32
    %c0_i32_0 = arith.constant 0 : i32
    %c0_i32_1 = arith.constant 0 : i32
    return %2, %c0_i32_0 : i32, i32
  }
  func.func @transform_2(%arg0: i32, %arg1: i32) -> (i32, i32, i32) {
    %c0_i32 = arith.constant 0 : i32
    %c0_i32_0 = arith.constant 0 : i32
    %c0_i32_1 = arith.constant 0 : i32
    return %arg0, %c0_i32, %c0_i32_0 : i32, i32, i32
  }
}

</mosaic_0001>

<bundles_post_ra>
// kernel: tpu_custom_call.1
= control target key start
LH: loop header
LB: loop body
LE: loop exit
PB: predicated region body
PF: predicated region fallthrough
CT: control target
= control target key end

     0   :  { %7 = vsyncpa [#allocation4], 0  ;;  %s270_s0 = inlined_call_operand.hbm [shape: f32[16,128], index: 0, kind: input, shape index: {}]   ;;  %s271_s1 = inlined_call_operand.hbm [shape: f32[16,128], index: 1, kind: input, shape index: {}]   ;;  %s272_s2 = inlined_call_operand.hbm [shape: f32[1,1,128], index: 2, kind: output, shape index: {}]  }
   0x1   :  { %8 = vsyncpa [#allocation7], 0 }
   0x2   :  { %9 = vsyncpa [#allocation5], 0  ;;  %s214_s9 = smov [#allocation3]   ;;  %s142_s13 = scalar_lea.hbm %s270_s0, 256 }
   0x3   :  { %s21_s10 = sshll.u32 %s214_s9, 4  ;;  %p143_p0 = scmp.ne.s32.totalorder %s270_s0, %s142_s13  ;;  %s22_s10 = int_to_ptr.vmem [resolvable:$true] %s21_s10 }
   0x4   :  { %p146_p1 = scmp.lt.u32.totalorder %s142_s13, %s270_s0 }
   0x6   :  { %p148_p2 = pnand %p146_p1, %p143_p0 }
   0x8   :  { %151 = shalt.err (!%p148_p2)
}
   0x9   :  { %s152_s18 = scalar_lea.vmem %s22_s10, 256  ;;  %p157_p4 = scmp.lt.s32.totalorder %s22_s10, %s22_s10 }
   0xa   :  { %p153_p3 = scmp.ne.s32.totalorder %s22_s10, %s152_s18  ;;  %p158_p5 = scmp.lt.s32.totalorder %s152_s18, %s152_s18 }
   0xc   :  { %p159_p6 = por %p158_p5, %p157_p4 }
   0xe   :  { %p160_p7 = pnand %p159_p6, %p153_p3 }
  0x10   :  { %163 = shalt.err (!%p160_p7)
}
  0x11   :  { %s215_s19 = smov 128   ;;  %s216_s20 = smov 8  }
  0x12   :  { %27 = dma.hbm_to_vmem [thread:$0]  %s270_s0, 256, %s22_s10, [#allocation4], %s215_s19, %s215_s19, %s216_s20  }
  0x13   :  { %s217_s23 = smov [#allocation6]   ;;  %s164_s27 = scalar_lea.hbm %s271_s1, 256 }
  0x14   :  { %s39_s24 = sshll.u32 %s217_s23, 4  ;;  %p165_p8 = scmp.ne.s32.totalorder %s271_s1, %s164_s27  ;;  %s40_s24 = int_to_ptr.vmem [resolvable:$true] %s39_s24 }
  0x15   :  { %p168_p9 = scmp.lt.u32.totalorder %s164_s27, %s271_s1 }
  0x17   :  { %p170_p10 = pnand %p168_p9, %p165_p8 }
  0x19   :  { %173 = shalt.err (!%p170_p10)
}
  0x1a   :  { %s174_s4 = scalar_lea.vmem %s40_s24, 256  ;;  %p179_p12 = scmp.lt.s32.totalorder %s40_s24, %s40_s24 }
  0x1b   :  { %p175_p11 = scmp.ne.s32.totalorder %s40_s24, %s174_s4  ;;  %p180_p13 = scmp.lt.s32.totalorder %s174_s4, %s174_s4 }
  0x1d   :  { %p181_p0 = por %p180_p13, %p179_p12 }
  0x1f   :  { %p182_p1 = pnand %p181_p0, %p175_p11 }
  0x21   :  { %185 = shalt.err (!%p182_p1)
}
  0x22   :  { %45 = dma.hbm_to_vmem [thread:$0]  %s271_s1, 256, %s40_s24, [#allocation7], %s215_s19, %s215_s19, %s216_s20  }
  0x23   :  { %208 = dma.done.wait [#allocation4], 256  }
  0x24   :  { %209 = vsyncadd [#allocation4], 4294967040 }
  0x25   :  { %210 = dma.done.wait [#allocation7], 256  }
  0x26   :  { %211 = vsyncadd [#allocation7], 4294967040  ;;  %v66_v0 = vld [vmem:[#allocation3] sm:$0xff]  ;;  %v67_v1 = vld [vmem:[#allocation3 + $0x8] sm:$0xff]  ;;  %s218_s1 = smov [#allocation8]  }
  0x27   :  { %v70_v2 = vadd.f32 1e-06, %v66_v0  ;;  %v71_v3 = vadd.f32 1e-06, %v67_v1  ;;  %v80_v4 = vsub.f32 1.000001, %v66_v0 }
  0x28   :  { %v81_v5 = vsub.f32 1.000001, %v67_v1  ;;  %v68_v6 = vld [vmem:[#allocation6] sm:$0xff]  ;;  %v69_v7 = vld [vmem:[#allocation6 + $0x8] sm:$0xff]  ;;  %s115_s6 = sshll.u32 %s218_s1, 4  ;;  %s116_s6 = int_to_ptr.vmem [resolvable:$true] %s115_s6 }
  0x29   :  { %134 = vlog2.f32 %v70_v2  ;;  %v78_v11 = vsub.f32 1.0, %v68_v6  ;;  %v79_v14 = vsub.f32 1.0, %v69_v7  ;;  %s186_s7 = scalar_lea.vmem %s116_s6, 16  ;;  %s190_s8 = scalar_lea.vmem %s116_s6, 32 }
  0x2a   :  { %136 = vlog2.f32 %v71_v3  ;;  %p187_p2 = scmp.ne.s32.totalorder %s116_s6, %s186_s7  ;;  %p191_p3 = scmp.lt.s32.totalorder %s116_s6, %s116_s6 }
  0x2b   :  { %138 = vlog2.f32 %v80_v4  ;;  %p192_p4 = scmp.lt.s32.totalorder %s190_s8, %s186_s7 }
  0x2c   :  { %140 = vlog2.f32 %v81_v5 }
  0x2d   :  { %p193_p5 = por %p192_p4, %p191_p3 }
  0x2f   :  { %p194_p6 = pnand %p193_p5, %p187_p2 }
  0x33   :  { %v135_v8 = vpop.eup %134 }
  0x34   :  { %v137_v9 = vpop.eup %136  ;;  %v73_v10 = vmul.f32 0.6931472, %v135_v8 }
  0x35   :  { %v139_v12 = vpop.eup %138  ;;  %v75_v13 = vmul.f32 0.6931472, %v137_v9 }
  0x36   :  { %v141_v15 = vpop.eup %140  ;;  %v76_v16 = vmul.f32 %v73_v10, %v68_v6  ;;  %v83_v17 = vmul.f32 0.6931472, %v139_v12 }
  0x37   :  { %v77_v18 = vmul.f32 %v75_v13, %v69_v7  ;;  %v85_v19 = vmul.f32 0.6931472, %v141_v15 }
  0x38   :  { %v86_v20 = vmul.f32 %v83_v17, %v78_v11 }
  0x39   :  { %v87_v21 = vmul.f32 %v85_v19, %v79_v14 }
  0x3a   :  { %v88_v22 = vadd.f32 %v86_v20, %v76_v16 }
  0x3b   :  { %v89_v23 = vadd.f32 %v87_v21, %v77_v18 }
  0x3d   :  { %v95_v24 = vadd.f32 %v89_v23, %v88_v22 }
  0x3f   :  { %v102_v25 = vrot.slane %v95_v24, 4 }
  0x41   :  { %v103_v26 = vadd.f32 %v102_v25, %v95_v24 }
  0x43   :  { %v104_v27 = vrot.slane %v103_v26, 2 }
  0x45   :  { %v105_v28 = vadd.f32 %v104_v27, %v103_v26 }
  0x47   :  { %v106_v29 = vrot.slane %v105_v28, 1 }
  0x49   :  { %v107_v30 = vadd.f32 %v106_v29, %v105_v28 }
  0x4b   :  { %108 = vst [vmem:[#allocation8] sm:$0x1] %v107_v30 }
  0x4c   :  { %197 = shalt.err (!%p194_p6)
}
  0x4d   :  { %s198_s11 = scalar_lea.hbm %s272_s2, 16 }
  0x4e   :  { %p199_p7 = scmp.ne.s32.totalorder %s272_s2, %s198_s11  ;;  %p202_p8 = scmp.lt.u32.totalorder %s198_s11, %s272_s2 }
  0x50   :  { %p204_p9 = pnand %p202_p8, %p199_p7 }
  0x52   :  { %207 = shalt.err (!%p204_p9)
}
  0x53   :  { %118 = dma.vmem_to_hbm [thread:$0]  %s116_s6, 16, %s272_s2, [#allocation5]  }
  0x54   :  { %212 = dma.done.wait [#allocation5], 16  }
  0x55   :  { %213 = vsyncadd [#allocation5], 4294967280 }
  0x56   :  { %122 = vsyncpa [#allocation4], 1 }
  0x57   :  { %123 = vsyncpa [#allocation7], 1 }
  0x58   :  { %124 = vsyncpa [#allocation5], 1 }

</bundles_post_ra>
